<compile_context>
chip_gen: v7x
topology: tpu7x:2x2x1
jax: 0.10.0
libtpu: 0.0.40
codegen_flags: <defaults>
</compile_context>

<pallas_src>
import functools
import math

import jax
import jax.numpy as jnp
from jax import lax
from jax.experimental import pallas as pl
from jax.experimental.pallas import tpu as pltpu


def _round_up(x, m):
    return ((x + m - 1) // m) * m


def _sublane_quantum(dtype):
    # rows per packed sublane group: 8 for 4-byte, 16 for 2-byte, 32 for 1-byte
    return max(8, 32 // jnp.dtype(dtype).itemsize)


def _flash_kernel(q_ref, k_ref, v_ref, o_ref, m_scr, l_scr, acc_scr, *,
                  scale, lk_valid, lk_padded, tk):
    kv = pl.program_id(2)

    @pl.when(kv == 0)
    def _init():
        m_scr[...] = jnp.full_like(m_scr, -jnp.inf)
        l_scr[...] = jnp.zeros_like(l_scr)
        acc_scr[...] = jnp.zeros_like(acc_scr)

    # Fold 1/sqrt(D) into q (cheaper than scaling the (tq, tk) scores), keep
    # the native dtype so the MXU is fed bf16/f32 operands directly.
    q = q_ref[...] * scale
    k = k_ref[...]
    v = v_ref[...]

    # scores = q @ k^T, batched, contracting the last axes -> no XLU transpose.
    qk = lax.dot_general(
        q, k,
        dimension_numbers=(((2,), (2,)), ((0,), (0,))),
        preferred_element_type=jnp.float32,
    )  # (bb, tq, tk) f32

    if lk_valid < lk_padded:
        # Mask padded key columns. Only the last kv block carries padding and
        # it always keeps >= 1 valid column, so the running max stays finite.
        col = kv * tk + lax.broadcasted_iota(jnp.int32, (1, 1, tk), 2)
        qk = jnp.where(col < lk_valid, qk, -1e30)

    # --- online softmax update (f32) ---
    m_prev = m_scr[...]
    m_new = jnp.maximum(m_prev, jnp.max(qk, axis=-1, keepdims=True))
    alpha = jnp.exp(m_prev - m_new)
    p = jnp.exp(qk - m_new)
    l_scr[...] = alpha * l_scr[...] + jnp.sum(p, axis=-1, keepdims=True)

    pv = lax.dot_general(
        p.astype(v.dtype), v,
        dimension_numbers=(((2,), (1,)), ((0,), (0,))),
        preferred_element_type=jnp.float32,
    )  # (bb, tq, Dvp) f32
    acc_scr[...] = alpha * acc_scr[...] + pv
    m_scr[...] = m_new

    @pl.when(kv == pl.num_programs(2) - 1)
    def _finalize():
        # Deferred normalization: one (tq, Dv) multiply instead of a (tq, tk)
        # multiply per kv step.
        inv = 1.0 / l_scr[...]
        o_ref[...] = (acc_scr[...] * inv).astype(o_ref.dtype)


def _block_footprint_bytes(bb, tq, tk, dp, dvp, itemsize):
    io = 2 * bb * (tq * dp + tk * dp + tk * dvp + tq * dvp) * itemsize  # dbl-buffered tiles
    scr = bb * (2 * tq + tq * dvp) * 4                                  # m, l, acc scratch
    tmp = 3 * bb * tq * tk * 4 + bb * tq * dvp * 4                      # qk / p temporaries
    return io + scr + tmp


def _vmem_capacity_bytes():
    try:
        info = pltpu.get_tpu_info()
        cap = getattr(info, "vmem_capacity_bytes", None)
        if cap:
            return int(cap)
    except Exception:
        pass
    return 64 * 1024 * 1024   # conservative fallback: v7x per-TensorCore VMEM


def sdpa(query, key, value, masking=None, *, block_b=1,
         tq_target=256, tk_target=512):
    """query: (B, Lq, D), key: (B, Lk, D), value: (B, Lk, Dv)."""
    # TODO(synk): `masking` list argument of the PyTorch Model not implemented.
    assert masking is None, "only the masking=None path is implemented"

    B, Lq, D = query.shape
    Bk, Lk, Dk = key.shape
    Bv, Lkv, Dv = value.shape
    assert D == Dk and Lk == Lkv and B == Bk == Bv

    dtype = query.dtype
    itemsize = jnp.dtype(dtype).itemsize
    q8 = _sublane_quantum(dtype)

    # Lane (last) dims -> x128; sequence tiles -> dtype sublane quantum.
    D_p = _round_up(D, 128)
    Dv_p = _round_up(Dv, 128)

    # --- tile selection under a generation-aware VMEM budget ---
    vmem_cap = _vmem_capacity_bytes()
    budget = int(0.45 * vmem_cap)         # ~28 MiB on v7x, ~57 MiB on v5e/v6e

    tq = min(_round_up(Lq, q8), _round_up(tq_target, q8))
    tk = min(_round_up(Lk, q8), _round_up(tk_target, q8))
    while (_block_footprint_bytes(block_b, tq, tk, D_p, Dv_p, itemsize) > budget
           and tk > q8):
        tk = max(q8, _round_up(tk // 2, q8))
    while (_block_footprint_bytes(block_b, tq, tk, D_p, Dv_p, itemsize) > budget
           and tq > q8):
        tq = max(q8, _round_up(tq // 2, q8))
    while (_block_footprint_bytes(block_b, tq, tk, D_p, Dv_p, itemsize) > budget
           and block_b > 1):
        block_b //= 2

    Lq_p = _round_up(Lq, tq)
    Lk_p = _round_up(Lk, tk)
    B_p = _round_up(B, block_b)

    def _pad3(x, b, s, f):
        if b or s or f:
            return jnp.pad(x, ((0, b), (0, s), (0, f)))
        return x

    qp = _pad3(query, B_p - B, Lq_p - Lq, D_p - D)
    kp = _pad3(key, B_p - B, Lk_p - Lk, D_p - D)
    vp = _pad3(value, B_p - B, Lk_p - Lk, Dv_p - Dv)

    grid = (B_p // block_b, Lq_p // tq, Lk_p // tk)

    footprint = _block_footprint_bytes(block_b, tq, tk, D_p, Dv_p, itemsize)
    vmem_limit = int(min(0.7 * vmem_cap, max(16 * 1024 * 1024, 2 * footprint)))

    kernel = functools.partial(
        _flash_kernel,
        scale=1.0 / math.sqrt(D),   # original (unpadded) head dim
        lk_valid=Lk,
        lk_padded=Lk_p,
        tk=tk,
    )

    out_p = pl.pallas_call(
        kernel,
        out_shape=jax.ShapeDtypeStruct((B_p, Lq_p, Dv_p), dtype),
        grid_spec=pltpu.PrefetchScalarGridSpec(
            num_scalar_prefetch=0,
            grid=grid,
            in_specs=[
                pl.BlockSpec((block_b, tq, D_p), lambda b, q, k: (b, q, 0)),
                pl.BlockSpec((block_b, tk, D_p), lambda b, q, k: (b, k, 0)),
                pl.BlockSpec((block_b, tk, Dv_p), lambda b, q, k: (b, k, 0)),
            ],
            out_specs=pl.BlockSpec((block_b, tq, Dv_p),
                                   lambda b, q, k: (b, q, 0)),
            scratch_shapes=[
                pltpu.VMEM((block_b, tq, 1), jnp.float32),      # running max
                pltpu.VMEM((block_b, tq, 1), jnp.float32),      # running sum
                pltpu.VMEM((block_b, tq, Dv_p), jnp.float32),   # accumulator
            ],
        ),
        compiler_params=pltpu.CompilerParams(
            dimension_semantics=("parallel", "parallel", "arbitrary"),
            vmem_limit_bytes=vmem_limit,
        ),
    )(qp, kp, vp)

    if (B_p, Lq_p, Dv_p) != (B, Lq, Dv):
        out_p = out_p[:B, :Lq, :Dv]
    return out_p


def sdpa_ref(query, key, value):
    qk = jnp.einsum("bqd,bkd->bqk", query, key) / math.sqrt(query.shape[-1])
    attn = jax.nn.softmax(qk, axis=-1)
    return jnp.einsum("bqk,bkv->bqv", attn, value)


if __name__ == "__main__":
    # Small, mutually-consistent shapes (the reference's inline example shapes
    # are inconsistent for matmul; we pick a shared D between query/key).
    B, Lq, Lk, D, Dv = 2, 8, 4, 32, 16

    k0 = jax.random.PRNGKey(0)
    kq, kk, kv = jax.random.split(k0, 3)
    query = jax.random.normal(kq, (B, Lq, D), dtype=jnp.float32)
    key = jax.random.normal(kk, (B, Lk, D), dtype=jnp.float32)
    value = jax.random.normal(kv, (B, Lk, Dv), dtype=jnp.float32)

    out = sdpa(query, key, value)
    jax.block_until_ready(out)

    ref = sdpa_ref(query, key, value)
    assert out.shape == (B, Lq, Dv)
    assert jnp.allclose(out, ref, atol=1e-2, rtol=1e-2), "mismatch vs reference"

    print("KERNEL_OK")
</pallas_src>

<mosaic_0001>
module attributes {stable_mosaic.version = 11 : i64} {
  func.func @_flash_kernel(%arg0: i32, %arg1: i32, %arg2: i32, %arg3: memref<1x8x128xf32, #tpu.memory_space<vmem>>, %arg4: memref<1x8x128xf32, #tpu.memory_space<vmem>>, %arg5: memref<1x8x128xf32, #tpu.memory_space<vmem>>, %arg6: memref<1x8x128xf32, #tpu.memory_space<vmem>>, %arg7: memref<1x8x1xf32, #tpu.memory_space<vmem>>, %arg8: memref<1x8x1xf32, #tpu.memory_space<vmem>>, %arg9: memref<1x8x128xf32, #tpu.memory_space<vmem>>) attributes {dimension_semantics = [#tpu.dimension_semantics<parallel>, #tpu.dimension_semantics<parallel>, #tpu.dimension_semantics<arbitrary>], iteration_bounds = array<i64: 2, 1, 1>, scalar_prefetch = 0 : i64, scratch_operands = 3 : i64, tpu.core_type = #tpu.core_type<tc>, window_params = [{transform_indices = @transform_0, window_bounds = array<i64: 1, 8, 128>}, {transform_indices = @transform_1, window_bounds = array<i64: 1, 8, 128>}, {transform_indices = @transform_2, window_bounds = array<i64: 1, 8, 128>}, {transform_indices = @transform_3, window_bounds = array<i64: 1, 8, 128>}]} {
    %c0_i32 = arith.constant 0 : i32
    %0 = arith.cmpi eq, %arg2, %c0_i32 : i32
    %1 = arith.extui %0 : i1 to i32
    %c0_i32_0 = arith.constant 0 : i32
    %2 = arith.cmpi ne, %1, %c0_i32_0 : i32
    scf.if %2 {
      %cst_34 = arith.constant 0xFF800000 : f32
      %44 = vector.broadcast %cst_34 : f32 to vector<1x8x1xf32>
      %c0_35 = arith.constant 0 : index
      %c0_36 = arith.constant 0 : index
      %c0_37 = arith.constant 0 : index
      %45 = vector.load %arg7[%c0_35, %c0_36, %c0_37] : memref<1x8x1xf32, #tpu.memory_space<vmem>>, vector<1x8x1xf32>
      tpu.vector_store %arg7[%c0_35, %c0_36, %c0_37], %44 {strides = array<i32>} : memref<1x8x1xf32, #tpu.memory_space<vmem>>, vector<1x8x1xf32>,
      %cst_38 = arith.constant 0.000000e+00 : f32
      %46 = vector.broadcast %cst_38 : f32 to vector<1x8x1xf32>
      %c0_39 = arith.constant 0 : index
      %c0_40 = arith.constant 0 : index
      %c0_41 = arith.constant 0 : index
      %47 = vector.load %arg8[%c0_39, %c0_40, %c0_41] : memref<1x8x1xf32, #tpu.memory_space<vmem>>, vector<1x8x1xf32>
      tpu.vector_store %arg8[%c0_39, %c0_40, %c0_41], %46 {strides = array<i32>} : memref<1x8x1xf32, #tpu.memory_space<vmem>>, vector<1x8x1xf32>,
      %cst_42 = arith.constant 0.000000e+00 : f32
      %48 = vector.broadcast %cst_42 : f32 to vector<1x8x128xf32>
      %c0_43 = arith.constant 0 : index
      %c0_44 = arith.constant 0 : index
      %c0_45 = arith.constant 0 : index
      %49 = vector.load %arg9[%c0_43, %c0_44, %c0_45] : memref<1x8x128xf32, #tpu.memory_space<vmem>>, vector<1x8x128xf32>
      tpu.vector_store %arg9[%c0_43, %c0_44, %c0_45], %48 {strides = array<i32>} : memref<1x8x128xf32, #tpu.memory_space<vmem>>, vector<1x8x128xf32>,
    } else {
    }
    %c0 = arith.constant 0 : index
    %c0_1 = arith.constant 0 : index
    %c0_2 = arith.constant 0 : index
    %3 = vector.load %arg3[%c0, %c0_1, %c0_2] : memref<1x8x128xf32, #tpu.memory_space<vmem>>, vector<1x8x128xf32>
    %cst = arith.constant 0.176776692 : f32
    %4 = vector.broadcast %cst : f32 to vector<1x8x128xf32>
    %5 = arith.mulf %3, %4 : vector<1x8x128xf32>
    %c0_3 = arith.constant 0 : index
    %c0_4 = arith.constant 0 : index
    %c0_5 = arith.constant 0 : index
    %6 = vector.load %arg4[%c0_3, %c0_4, %c0_5] : memref<1x8x128xf32, #tpu.memory_space<vmem>>, vector<1x8x128xf32>
    %c0_6 = arith.constant 0 : index
    %c0_7 = arith.constant 0 : index
    %c0_8 = arith.constant 0 : index
    %7 = vector.load %arg5[%c0_6, %c0_7, %c0_8] : memref<1x8x128xf32, #tpu.memory_space<vmem>>, vector<1x8x128xf32>
    %cst_9 = arith.constant dense<0.000000e+00> : vector<1x8x8xf32>
    %8 = tpu.matmul %5, %6, %cst_9 {dimension_numbers = #tpu.dot_dimension_numbers<[2], [2], [1], [1], [0, 0, 0, 1, 1, 1], [0], [0]>} : vector<1x8x128xf32>, vector<1x8x128xf32>, vector<1x8x8xf32> -> vector<1x8x8xf32>
    %c8_i32 = arith.constant 8 : i32
    %9 = arith.muli %arg2, %c8_i32 : i32
    %10 = tpu.iota {dimensions = array<i32: 2>} : vector<1x1x8xi32>
    %11 = vector.broadcast %9 : i32 to vector<1x1x8xi32>
    %12 = arith.addi %11, %10 : vector<1x1x8xi32>
    %c4_i32 = arith.constant 4 : i32
    %13 = vector.broadcast %c4_i32 : i32 to vector<1x1x8xi32>
    %14 = arith.cmpi slt, %12, %13 : vector<1x1x8xi32>
    %cst_10 = arith.constant -1.000000e+30 : f32
    %15 = vector.shape_cast %14 : vector<1x1x8xi1> to vector<1x1x8xi1>
    %16 = vector.broadcast %15 : vector<1x1x8xi1> to vector<1x8x8xi1>
    %17 = vector.broadcast %cst_10 : f32 to vector<1x8x8xf32>
    %18 = arith.select %16, %8, %17 : vector<1x8x8xi1>, vector<1x8x8xf32>
    %c0_11 = arith.constant 0 : index
    %c0_12 = arith.constant 0 : index
    %c0_13 = arith.constant 0 : index
    %19 = vector.load %arg7[%c0_11, %c0_12, %c0_13] : memref<1x8x1xf32, #tpu.memory_space<vmem>>, vector<1x8x1xf32>
    %cst_14 = arith.constant dense<0xFF800000> : vector<1x8xf32>
    %20 = vector.multi_reduction <maximumf>, %18, %cst_14 [2] : vector<1x8x8xf32> to vector<1x8xf32>
    %21 = vector.shape_cast %20 : vector<1x8xf32> to vector<1x8x1xf32>
    %22 = arith.maximumf %19, %21 : vector<1x8x1xf32>
    %23 = arith.subf %19, %22 : vector<1x8x1xf32>
    %24 = math.exp %23 : vector<1x8x1xf32>
    %25 = vector.broadcast %22 : vector<1x8x1xf32> to vector<1x8x8xf32>
    %26 = arith.subf %18, %25 : vector<1x8x8xf32>
    %27 = math.exp %26 : vector<1x8x8xf32>
    %c0_15 = arith.constant 0 : index
    %c0_16 = arith.constant 0 : index
    %c0_17 = arith.constant 0 : index
    %28 = vector.load %arg8[%c0_15, %c0_16, %c0_17] : memref<1x8x1xf32, #tpu.memory_space<vmem>>, vector<1x8x1xf32>
    %29 = arith.mulf %24, %28 : vector<1x8x1xf32>
    %cst_18 = arith.constant dense<0.000000e+00> : vector<1x8xf32>
    %30 = vector.multi_reduction <add>, %27, %cst_18 [2] : vector<1x8x8xf32> to vector<1x8xf32>
    %31 = vector.shape_cast %30 : vector<1x8xf32> to vector<1x8x1xf32>
    %32 = arith.addf %29, %31 : vector<1x8x1xf32>
    %c0_19 = arith.constant 0 : index
    %c0_20 = arith.constant 0 : index
    %c0_21 = arith.constant 0 : index
    %33 = vector.load %arg8[%c0_19, %c0_20, %c0_21] : memref<1x8x1xf32, #tpu.memory_space<vmem>>, vector<1x8x1xf32>
    tpu.vector_store %arg8[%c0_19, %c0_20, %c0_21], %32 {strides = array<i32>} : memref<1x8x1xf32, #tpu.memory_space<vmem>>, vector<1x8x1xf32>,
    %cst_22 = arith.constant dense<0.000000e+00> : vector<1x8x128xf32>
    %34 = tpu.matmul %27, %7, %cst_22 {dimension_numbers = #tpu.dot_dimension_numbers<[2], [1], [1], [2], [0, 0, 0, 1, 1, 2], [0], [0]>} : vector<1x8x8xf32>, vector<1x8x128xf32>, vector<1x8x128xf32> -> vector<1x8x128xf32>
    %c0_23 = arith.constant 0 : index
    %c0_24 = arith.constant 0 : index
    %c0_25 = arith.constant 0 : index
    %35 = vector.load %arg9[%c0_23, %c0_24, %c0_25] : memref<1x8x128xf32, #tpu.memory_space<vmem>>, vector<1x8x128xf32>
    %36 = vector.broadcast %24 : vector<1x8x1xf32> to vector<1x8x128xf32>
    %37 = arith.mulf %36, %35 : vector<1x8x128xf32>
    %38 = arith.addf %37, %34 : vector<1x8x128xf32>
    %c0_26 = arith.constant 0 : index
    %c0_27 = arith.constant 0 : index
    %c0_28 = arith.constant 0 : index
    %39 = vector.load %arg9[%c0_26, %c0_27, %c0_28] : memref<1x8x128xf32, #tpu.memory_space<vmem>>, vector<1x8x128xf32>
    tpu.vector_store %arg9[%c0_26, %c0_27, %c0_28], %38 {strides = array<i32>} : memref<1x8x128xf32, #tpu.memory_space<vmem>>, vector<1x8x128xf32>,
    %c0_29 = arith.constant 0 : index
    %c0_30 = arith.constant 0 : index
    %c0_31 = arith.constant 0 : index
    %40 = vector.load %arg7[%c0_29, %c0_30, %c0_31] : memref<1x8x1xf32, #tpu.memory_space<vmem>>, vector<1x8x1xf32>
    tpu.vector_store %arg7[%c0_29, %c0_30, %c0_31], %22 {strides = array<i32>} : memref<1x8x1xf32, #tpu.memory_space<vmem>>, vector<1x8x1xf32>,
    %c0_i32_32 = arith.constant 0 : i32
    %41 = arith.cmpi eq, %arg2, %c0_i32_32 : i32
    %42 = arith.extui %41 : i1 to i32
    %c0_i32_33 = arith.constant 0 : i32
    %43 = arith.cmpi ne, %42, %c0_i32_33 : i32
    scf.if %43 {
      %c0_34 = arith.constant 0 : index
      %c0_35 = arith.constant 0 : index
      %c0_36 = arith.constant 0 : index
      %44 = vector.load %arg8[%c0_34, %c0_35, %c0_36] : memref<1x8x1xf32, #tpu.memory_space<vmem>>, vector<1x8x1xf32>
      %cst_37 = arith.constant 1.000000e+00 : f32
      %45 = vector.broadcast %cst_37 : f32 to vector<1x8x1xf32>
      %46 = arith.divf %45, %44 : vector<1x8x1xf32>
      %c0_38 = arith.constant 0 : index
      %c0_39 = arith.constant 0 : index
      %c0_40 = arith.constant 0 : index
      %47 = vector.load %arg9[%c0_38, %c0_39, %c0_40] : memref<1x8x128xf32, #tpu.memory_space<vmem>>, vector<1x8x128xf32>
      %48 = vector.broadcast %46 : vector<1x8x1xf32> to vector<1x8x128xf32>
      %49 = arith.mulf %47, %48 : vector<1x8x128xf32>
      %c0_41 = arith.constant 0 : index
      %c0_42 = arith.constant 0 : index
      %c0_43 = arith.constant 0 : index
      %50 = vector.load %arg6[%c0_41, %c0_42, %c0_43] : memref<1x8x128xf32, #tpu.memory_space<vmem>>, vector<1x8x128xf32>
      tpu.vector_store %arg6[%c0_41, %c0_42, %c0_43], %49 {strides = array<i32>} : memref<1x8x128xf32, #tpu.memory_space<vmem>>, vector<1x8x128xf32>,
    } else {
    }
    return
  }
  func.func @transform_0(%arg0: i32, %arg1: i32, %arg2: i32) -> (i32, i32, i32) {
    %c0_i32 = arith.constant 0 : i32
    %c0_i32_0 = arith.constant 0 : i32
    return %arg0, %arg1, %c0_i32 : i32, i32, i32
  }
  func.func @transform_1(%arg0: i32, %arg1: i32, %arg2: i32) -> (i32, i32, i32) {
    %c0_i32 = arith.constant 0 : i32
    %c0_i32_0 = arith.constant 0 : i32
    return %arg0, %arg2, %c0_i32 : i32, i32, i32
  }
  func.func @transform_2(%arg0: i32, %arg1: i32, %arg2: i32) -> (i32, i32, i32) {
    %c0_i32 = arith.constant 0 : i32
    %c0_i32_0 = arith.constant 0 : i32
    return %arg0, %arg2, %c0_i32 : i32, i32, i32
  }
  func.func @transform_3(%arg0: i32, %arg1: i32, %arg2: i32) -> (i32, i32, i32) {
    %c0_i32 = arith.constant 0 : i32
    %c0_i32_0 = arith.constant 0 : i32
    return %arg0, %arg1, %c0_i32 : i32, i32, i32
  }
}

</mosaic_0001>

<bundles_post_ra>
// kernel: tpu_custom_call.1
= control target key start
LH: loop header
LB: loop body
LE: loop exit
PB: predicated region body
PF: predicated region fallthrough
CT: control target
= control target key end

     0   :  { %s1238_s0 = inlined_call_operand.hbm [shape: f32[2,8,128], index: 0, kind: input, shape index: {}]   ;;  %s1239_s1 = inlined_call_operand.hbm [shape: f32[2,8,128], index: 1, kind: input, shape index: {}]   ;;  %s1240_s2 = inlined_call_operand.hbm [shape: f32[2,8,128], index: 2, kind: input, shape index: {}]   ;;  %s1241_s3 = inlined_call_operand.hbm [shape: f32[2,8,128], index: 3, kind: output, shape index: {}]  }
   0x1   :  { %1247 = sst [smem:[#allocation18_spill]] %s1239_s1 }
   0x2   :  { %8 = vsyncpa [#allocation6], 0 }
   0x3   :  { %10 = vsyncpa [#allocation6 + $0x1], 0 }
   0x4   :  { %11 = vsyncpa [#allocation9], 0 }
   0x5   :  { %13 = vsyncpa [#allocation9 + $0x1], 0 }
   0x6   :  { %14 = vsyncpa [#allocation7], 0 }
   0x7   :  { %16 = vsyncpa [#allocation7 + $0x1], 0  ;;  %s967_s12 = smov 0   ;;  %s969_s13 = smov 0  }
   0x8   :  { %s971_s14 = smov 0   ;;  %s973_s15 = smov 0  }
   0x9   :  { %s975_s16 = smov 0   ;;  %s977_s17 = smov 0  }
   0xa LB: > { %1248 = sst [smem:[#allocation15_spill]] %s933_s16  ;;  %s998_s18 = sadd.s32 4294967295, %s937_s17   ;;  %s937_s17 = sphi %s977_s17, %s22_s17   ;;  %s933_s16 = sphi %s975_s16, %s1269_s16   ;;  %s929_s15 = sphi %s973_s15, %s1268_s15   ;;  %s925_s14 = sphi %s971_s14, %s1272_s14   ;;  %s921_s13 = sphi %s969_s13, %s1271_s13   ;;  %s917_s12 = sphi %s967_s12, %s1270_s12  }
   0xb   : > { %s644_s19 = sadd.s32 4294967294, %s937_s17   ;;  %s41_s20 = sadd.s32 1, %s933_s16 }
   0xc   : > { %s50_s21 = sadd.s32 1, %s925_s14  ;;  %p43_p0 = scmp.ge.s32.totalorder %s41_s20, 2 }
   0xd   : > { %p57_p1 = scmp.ne.s32.totalorder %s925_s14, %s921_s13  ;;  %p58_p2 = scmp.eq.s32.totalorder %s937_s17, 0 }
   0xe   : > { %p63_p3 = scmp.ne.s32.totalorder %s921_s13, %s917_s12  ;;  %s1274_s20 = smov (%p43_p0, %s41_s20), 0 }
   0xf   : > { %1249 = sst [smem:[#allocation16_spill]] %s1274_s20  ;;  %p1010_p4 = por %p58_p2, %p57_p1 }
  0x10   : > { %p64_p5 = scmp.eq.s32.totalorder %s998_s18, 0  ;;  %s45_s23 = ssub.s32 %s933_s16, %s1274_s20 }
  0x11   : > { %p145_p6 = scmp.eq.s32.totalorder %s998_s18, 1  ;;  %p48_p7 = scmp.eq.s32.totalorder %s45_s23, 0 }
  0x12   : > { %p1018_p8 = por %p64_p5, %p63_p3  ;;  %p151_p10 = scmp.eq.s32.totalorder %s644_s19, 1 }
  0x13   : > { %p1022_p9 = por %p145_p6, %p57_p1  ;;  %p699_p13 = scmp.lt.s32.totalorder %s937_s17, 2 }
  0x14   : > { %s1251_s24 = scalar_select %p1018_p8, 1, 0 }
  0x15   : > { %s1252_s25 = scalar_select %p1022_p9, 1, 0 }
  0x16   : > { %s1027_s26 = scalar_select %p48_p7, %s925_s14, %s50_s21  }
  0x17   : > { %p1029_p11 = por %p151_p10, %p63_p3  ;;  %s171_s28 = sand.u32 1, %s925_s14  }
  0x18   : > { %1253 = sst [smem:[#allocation17_spill]] %s1027_s26  ;;  %s1038_s29 = sshll.u32 %s171_s28, 3 }
  0x19   : > { %s1254_s27 = scalar_select %p1029_p11, 1, 0 }
  0x1a   : > { %s1041_s30 = sshll.u32 %s933_s16, 7  ;;  %p1045_p0 = pnand %p699_p13, %p1010_p4 }
  0x1b   : > { %s190_s5 = sand.u32 1, %s937_s17   ;;  %s1256_s1 = sld [smem:[#allocation18_spill]] }
  0x1c   : > { %s1255_s4 = scalar_select %p1045_p0, 1, 0 }
  0x1d   : > { %s194_s9 = scalar_lea.vmem [#allocation8], %s1038_s29  ;;  %s1061_s11 = scalar_lea.sflag [#allocation9], %s190_s5 }
  0x1e   : > { %s202_s10 = sshll.u32 %s194_s9, 4  ;;  %p1067_p4 = pneg %p1045_p0  ;;  %s1058_s10 = int_to_ptr.vmem [resolvable:$true] %s202_s10 }
  0x21   : > { %s1054_s8 = scalar_lea.hbm %s1256_s1, %s1041_s30  ;;  %s766_s6 = scalar_lea.hbm %s1256_s1, 256 }
  0x22   : > { %s761_s19 = scalar_lea.hbm %s1054_s8, 128  ;;  %p767_p7 = scmp.lt.u32.totalorder %s1054_s8, %s1256_s1 }
  0x23   : > { %p762_p3 = scmp.ne.s32.totalorder %s1054_s8, %s761_s19  ;;  %p768_p10 = scmp.lt.u32.totalorder %s766_s6, %s761_s19 }
  0x24   : > { %p770_p12 = scmp.lt.u32.totalorder %s761_s19, %s1054_s8 }
  0x25   : > { %p764_p5 = pnand %p1067_p4, %p762_p3  ;;  %p769_p13 = por %p768_p10, %p767_p7 }
  0x27   : > { %p765_p6 = pneg %p764_p5  ;;  %p771_p1 = por %p770_p12, %p769_p13 }
  0x29   : > { %p772_p2 = pnand %p771_p1, %p765_p6 }
  0x2b   : > { %775 = shalt.err (!%p772_p2)
}
  0x2c   : > { %s776_s5 = scalar_lea.vmem %s1058_s10, 128  ;;  %s939_s22 = smov [#allocation8]  }
  0x2d   : > { %p777_p3 = scmp.ne.s32.totalorder %s1058_s10, %s776_s5  ;;  %s781_s23 = sshll.u32 %s939_s22, 4  ;;  %s782_s23 = int_to_ptr.vmem [resolvable:$false] %s781_s23 }
  0x2e   : > { %s783_s7 = scalar_lea.vmem %s782_s23, 256  ;;  %p784_p9 = scmp.lt.s32.totalorder %s1058_s10, %s782_s23 }
  0x2f   : > { %p779_p5 = pnand %p777_p3, %p1067_p4  ;;  %p785_p8 = scmp.lt.s32.totalorder %s783_s7, %s776_s5 }
  0x31   : > { %p780_p11 = pneg %p779_p5  ;;  %p786_p7 = por %p785_p8, %p784_p9 }
  0x33   : > { %p787_p10 = pnand %p786_p7, %p780_p11 }
  0x35   : > { %790 = shalt.err (!%p787_p10)
}
  0x36   : > { %691 = dma.hbm_to_vmem [thread:$0]  (!%p1045_p0), %s1054_s8, 128, %s1058_s10, %s1061_s11  }
  0x37   : > { %p1258_p12 = scmp.lt.s32.totalorder %s937_s17, 3  ;;  %p1259_p1 = scmp.ge.s32.totalorder %s937_s17, 1 }
  0x38   : > { %s1103_s5 = scalar_lea.hbm %s1238_s0, %s1041_s30  ;;  %s175_s22 = scalar_lea.vmem [#allocation5], %s1038_s29 }
  0x39   : > { %p1095_p2 = pnand %p1259_p1, %p1258_p12  ;;  %s183_s23 = sshll.u32 %s175_s22, 4  ;;  %s1106_s23 = int_to_ptr.vmem [resolvable:$true] %s183_s23 }
  0x3a   : > { %s1112_s7 = scalar_lea.hbm %s1240_s2, %s1041_s30  ;;  %s172_s1 = scalar_lea.sflag [#allocation6], %s171_s28 }
  0x3b   : > { %s1260_s19 = scalar_select %p1095_p2, 1, 0 }
  0x3c   : > { %s791_s20 = scalar_lea.hbm %s1103_s5, 128  ;;  %s796_s16 = scalar_lea.hbm %s1238_s0, 256 }
  0x3d   : > { %p792_p8 = scmp.ne.s32.totalorder %s1103_s5, %s791_s20  ;;  %p797_p6 = scmp.lt.u32.totalorder %s1103_s5, %s1238_s0 }
  0x3e   : > { %p798_p13 = scmp.lt.u32.totalorder %s796_s16, %s791_s20  ;;  %p800_p5 = scmp.lt.u32.totalorder %s791_s20, %s1103_s5 }
  0x3f   : > { %p794_p9 = pnand %p792_p8, %p1067_p4 }
  0x40   : > { %p799_p3 = por %p798_p13, %p797_p6 }
  0x41   : > { %p795_p11 = pneg %p794_p9 }
  0x42   : > { %p801_p7 = por %p800_p5, %p799_p3 }
  0x44   : > { %p802_p10 = pnand %p801_p7, %p795_p11 }
  0x46   : > { %805 = shalt.err (!%p802_p10)
}
  0x47   : > { %s806_s28 = scalar_lea.vmem %s1106_s23, 128  ;;  %s940_s30 = smov [#allocation5]  }
  0x48   : > { %p807_p12 = scmp.ne.s32.totalorder %s1106_s23, %s806_s28  ;;  %s811_s8 = sshll.u32 %s940_s30, 4  ;;  %s812_s8 = int_to_ptr.vmem [resolvable:$false] %s811_s8 }
  0x49   : > { %s813_s26 = scalar_lea.vmem %s812_s8, 256  ;;  %p814_p9 = scmp.lt.s32.totalorder %s1106_s23, %s812_s8 }
  0x4a   : > { %p809_p1 = pnand %p807_p12, %p1067_p4  ;;  %p815_p2 = scmp.lt.s32.totalorder %s813_s26, %s806_s28 }
  0x4c   : > { %p810_p8 = pneg %p809_p1  ;;  %p816_p6 = por %p815_p2, %p814_p9 }
  0x4e   : > { %p817_p13 = pnand %p816_p6, %p810_p8 }
  0x50   : > { %820 = shalt.err (!%p817_p13)
}
  0x51   : > { %688 = dma.hbm_to_vmem [thread:$0]  (!%p1045_p0), %s1103_s5, 128, %s1106_s23, %s172_s1  }
  0x52   : > { %s213_s16 = scalar_lea.vmem [#allocation10], %s1038_s29  ;;  %s821_s10 = scalar_lea.hbm %s1112_s7, 128 }
  0x53   : > { %s221_s20 = sshll.u32 %s213_s16, 4  ;;  %p822_p11 = scmp.ne.s32.totalorder %s1112_s7, %s821_s10  ;;  %s222_s20 = int_to_ptr.vmem [resolvable:$true] %s221_s20 }
  0x54   : > { %s826_s22 = scalar_lea.hbm %s1240_s2, 256  ;;  %p827_p5 = scmp.lt.u32.totalorder %s1112_s7, %s1240_s2 }
  0x55   : > { %p824_p2 = pnand %p822_p11, %p1067_p4  ;;  %p828_p7 = scmp.lt.u32.totalorder %s826_s22, %s821_s10 }
  0x56   : > { %p830_p12 = scmp.lt.u32.totalorder %s821_s10, %s1112_s7 }
  0x57   : > { %p825_p3 = pneg %p824_p2  ;;  %p829_p10 = por %p828_p7, %p827_p5 }
  0x59   : > { %p831_p1 = por %p830_p12, %p829_p10 }
  0x5b   : > { %p832_p8 = pnand %p831_p1, %p825_p3 }
  0x5d   : > { %835 = shalt.err (!%p832_p8)
}
  0x5e   : > { %s836_s1 = scalar_lea.vmem %s222_s20, 128  ;;  %s941_s29 = smov [#allocation10]  }
  0x5f   : > { %p837_p9 = scmp.ne.s32.totalorder %s222_s20, %s836_s1  ;;  %s841_s5 = sshll.u32 %s941_s29, 4  ;;  %s842_s5 = int_to_ptr.vmem [resolvable:$false] %s841_s5 }
  0x60   : > { %s843_s23 = scalar_lea.vmem %s842_s5, 256  ;;  %p844_p11 = scmp.lt.s32.totalorder %s222_s20, %s842_s5 }
  0x61   : > { %p839_p6 = pnand %p837_p9, %p1067_p4  ;;  %p845_p2 = scmp.lt.s32.totalorder %s843_s23, %s836_s1 }
  0x63   : > { %p840_p13 = pneg %p839_p6  ;;  %p846_p0 = por %p845_p2, %p844_p11 }
  0x65   : > { %p847_p5 = pnand %p846_p0, %p840_p13 }
  0x67   : > { %850 = shalt.err (!%p847_p5)
}
  0x68   : > { %p1261_p7 = scmp.ne.s32.totalorder %s1255_s4, 0  ;;  %p1262_p3 = scmp.ne.s32.totalorder %s1260_s19, 0 }
  0x69   : > { %s1159_s21 = sand.u32 (!%p1262_p3), 1, %s921_s13   ;;  %p1263_p0 = scmp.ne.s32.totalorder (!%p1262_p3), %s1251_s24, 0 }
  0x6a   : > { %694 = dma.hbm_to_vmem [thread:$0]  (!%p1261_p7), %s1112_s7, 128, %s222_s20, %s1061_s11  }
  0x6b   : > { %230 = sbr.rel (%p1262_p3) target bundleno = 933 (0x3a5), region = 32  ;;  %s1162_s8 = sshll.u32 (!%p1262_p3), %s1159_s21, 3 }
  0x6c   : > { %s233_s26 = scalar_lea.sflag (!%p1262_p3), [#allocation6], %s1159_s21  ;;  %s236_s16 = scalar_lea.vmem (!%p1262_p3), [#allocation5], %s1162_s8 }
  0x72   : > { %904 = dma.done.wait (%p1263_p0), %s233_s26, 128  }
  0x73   : > { %906 = vsyncadd (%p1263_p0), %s233_s26, 4294967168  ;;  %s241_s4 = sand.u32 1, %s998_s18   ;;  %s245_s19 = scalar_lea.vmem [#allocation8], %s1162_s8 }
  0x74   : > { %s242_s11 = scalar_lea.sflag [#allocation9], %s241_s4 }
  0x75   : > { %908 = dma.done.wait (%p1263_p0), %s242_s11, 256  }
  0x76   : > { %910 = vsyncadd (%p1263_p0), %s242_s11, 4294967040  ;;  %vm291_vm0 = vcmask 7168   ;;  %v942_v0 = vmov 0.0   ;;  %vm943_vm1 = vmmov 0   ;;  %v297_v1 = vld [vmem:[%s245_s19] sm:$0xff]  ;;  %v295_v2 = vld [vmem:[%s236_s16] sm:$0xff]  ;;  %v370_v5 = vlaneseq }
  0x77   : > { %293 = vst.msk [vmem:[#allocation3] sm:$0xff] %vm291_vm0, %v942_v0  ;;  %667 = vmatprep.subr.mxu0 %v942_v0  ;;  %669 = vmatprep.mubr.msk.f32.mxu0 %vm943_vm1, %v942_v0  ;;  %v296_v3 = vmul.f32 0.17677669, %v295_v2  ;;  %v944_v4 = vmov -inf   ;;  %vm379_vm3 = vcmask 64512   ;;  %v945_v11 = vmov 0  }
  0x78   : > { %672 = vmatprep.subr.mxu1 %v942_v0  ;;  %674 = vmatprep.mubr.msk.f32.mxu1 %vm943_vm1, %v942_v0  ;;  %292 = vst.msk [vmem:[#allocation2] sm:$0xff] %vm291_vm0, %v944_v4  ;;  %v371_v6 = vand.u32 127, %v370_v5  ;;  %s254_s18 = scalar_lea.vmem [#allocation10], %s1162_s8  ;;  %s660_s24 = sshll.u32 %s929_s15, 7 }
  0x79   : > { %668 = vmatpush3.xpose.msra.mxu0 %v297_v1  ;;  %753 = vset.pattern.permute.xlu0 %v945_v11  ;;  %v298_v16 = vld [vmem:[%s254_s18] sm:$0xff]  ;;  %s286_s7 = scalar_lea.vmem [#allocation11], %s1162_s8  ;;  %s1189_s9 = scalar_lea.hbm %s1241_s3, %s660_s24 }
  0x7a   : > { %vm374_vm2 = vcmp.lt.s32.totalorder %v371_v6, 4  ;;  %754 = vset.pattern.permute.xlu1 %v945_v11  ;;  %673 = vmatpush3.msra.mxu1 %v298_v16  ;;  %s515_s20 = sshll.u32 %s286_s7, 4  ;;  %s501_s22 = scalar_lea.sflag [#allocation7], %s1159_s21  ;;  %s1191_s20 = int_to_ptr.vmem [resolvable:$true] %s515_s20 }
  0x7b   : > { %s851_s28 = scalar_lea.vmem %s1191_s20, 128  ;;  %p1264_p10 = scmp.ne.s32.totalorder %s1252_s25, 0 }
  0x7c   : > { %670 = vmatmul.mubr.f32.vlgmr.msra.gmra.mrb[0].mxu0 %v296_v3  ;;  %p852_p4 = scmp.ne.s32.totalorder %s1191_s20, %s851_s28  ;;  %s946_s15 = smov [#allocation11]  }
  0x7d   : > { %s855_s30 = sshll.u32 %s946_s15, 4  ;;  %s856_s30 = int_to_ptr.vmem [resolvable:$false] %s855_s30 }
  0x7e   : > { %v395_v24 = vld [vmem:[#allocation3] sm:$0xff]  ;;  %p853_p12 = pnand %p852_p4, %p1264_p10  ;;  %s857_s1 = scalar_lea.vmem %s856_s30, 256 }
  0x7f   : > { %v378_v12 = vld [vmem:[#allocation2] sm:$0xff]  ;;  %p858_p8 = scmp.lt.s32.totalorder %s1191_s20, %s856_s30  ;;  %p859_p9 = scmp.lt.s32.totalorder %s857_s1, %s851_s28 }
  0x80   : > { %p854_p1 = pneg %p853_p12 }
  0x81   : > { %p860_p6 = por %p859_p9, %p858_p8 }
  0x83   : > { %p861_p13 = pnand %p860_p6, %p854_p1 }
 0x14f   : > { %v365_v7 = vpop.f32.mrb[0].mxu0 }
 0x150   : > { %v377_v8 = vsel %vm374_vm2, %v365_v7, -1e+30  ;;  %v671_v9 = vpop.f32.mrb[1].mxu0 }
 0x151   : > { %v380_v10 = vsel %vm379_vm3, %v377_v8, -inf }
 0x152   : > { %381 = vmax.xlane.f32.xlu0 %v380_v10 }
 0x1df   : > { %v382_v13 = vpop.xlane.xlu0 %381 }
 0x1e0   : > { %v383_v14 = vmax.f32 %v378_v12, %v382_v13 }
 0x1e2   : > { %v384_v15 = vsub.f32 %v378_v12, %v383_v14  ;;  %485 = vst.msk [vmem:[#allocation2] sm:$0xff] %vm291_vm0, %v383_v14  ;;  %389 = vperm.xlu0 %753, %v383_v14  }
 0x1e4   : > { %v385_v22 = vmul.f32 1.442695, %v384_v15 }
 0x261   : > { %v390_v17 = vpop.permute.xlu0 %389 }
 0x262   : > { %v392_v18 = vsub.f32 %v377_v8, %v390_v17 }
 0x264   : > { %v393_v19 = vmul.f32 1.442695, %v392_v18 }
 0x266   : > { %755 = vpow2.f32 %v393_v19 }
 0x267   : > { %757 = vpow2.f32 %v385_v22 }
 0x270   : > { %v756_v20 = vpop.eup %755 }
 0x271   : > { %675 = vmatmul.mubr.msk.f32.vlgmr.msra.gmra.mrb[0].mxu1 %vm379_vm3, %v756_v20  ;;  %v397_v21 = vsel %vm379_vm3, %v756_v20, 0.0  ;;  %v758_v23 = vpop.eup %757 }
 0x272   : > { %398 = vadd.xlane.f32.xlu1 %v397_v21  ;;  %v396_v25 = vmul.f32 %v758_v23, %v395_v24 }
 0x283   : > { %479 = vperm.xlu1 %754, %v758_v23  }
 0x2ff   : > { %v399_v26 = vpop.xlane.xlu1 %398 }
 0x300   : > { %v400_v27 = vadd.f32 %v399_v26, %v396_v25 }
 0x302   : > { %402 = vst.msk [vmem:[#allocation3] sm:$0xff] %vm291_vm0, %v400_v27 }
 0x303   : > { %v480_v32 = vpop.permute.xlu1 %479 }
 0x304   : > { %v482_v33 = vmul.f32 0.0, %v480_v32 }
 0x309   : > { %v489_v28 = vld [vmem:[#allocation3] sm:$0xff] }
 0x30a   : > { %759 = vrcp.f32 %v489_v28 }
 0x314   : > { %v760_v29 = vpop.eup %759 }
 0x315   : > { %495 = vperm.xlu1 %754, %v760_v29  }
 0x344   : > { %v472_v30 = vpop.f32.mrb[0].mxu1 }
 0x345   : > { %v676_v31 = vpop.f32.mrb[1].mxu1  ;;  %v483_v34 = vadd.f32 %v482_v33, %v472_v30 }
 0x394   : > { %v496_v35 = vpop.permute.xlu1 %495 }
 0x395   : > { %v498_v36 = vmul.f32 %v496_v35, %v483_v34 }
 0x397   : > { %499 = vst [vmem:[%s286_s7] sm:$0xff] %v498_v36 }
 0x398   : > { %864 = shalt.err (!%p861_p13)
}
 0x399   : > { %s865_s29 = scalar_lea.hbm %s1189_s9, 128  ;;  %s869_s21 = scalar_lea.hbm %s1241_s3, 256 }
 0x39a   : > { %p866_p11 = scmp.ne.s32.totalorder %s1189_s9, %s865_s29  ;;  %p870_p7 = scmp.lt.u32.totalorder %s1189_s9, %s1241_s3 }
 0x39b   : > { %p871_p3 = scmp.lt.u32.totalorder %s869_s21, %s865_s29  ;;  %p873_p4 = scmp.lt.u32.totalorder %s865_s29, %s1189_s9 }
 0x39c   : > { %p867_p2 = pnand %p866_p11, %p1264_p10 }
 0x39d   : > { %p872_p0 = por %p871_p3, %p870_p7 }
 0x39e   : > { %p868_p5 = pneg %p867_p2 }
 0x39f   : > { %p874_p12 = por %p873_p4, %p872_p0 }
 0x3a1   : > { %p875_p1 = pnand %p874_p12, %p868_p5 }
 0x3a3   : > { %878 = shalt.err (!%p875_p1)
}
 0x3a4   : > { %683 = dma.vmem_to_hbm [thread:$0]  (%p1264_p10), %s1191_s20, 128, %s1189_s9, %s501_s22  }
 0x3a5 PF: > { %s527_s16 = sand.u32 1, %s917_s12   ;;  %p1265_p8 = scmp.ne.s32.totalorder %s1254_s27, 0 }
 0x3a6   : > { %p1266_p9 = scmp.ge.s32.totalorder %s937_s17, 2  ;;  %s528_s4 = scalar_lea.sflag [#allocation7], %s527_s16 }
 0x3a8   : > { %p696_p6 = pnand %p1266_p9, %p1265_p8 }
 0x3aa   : > { %912 = dma.done.wait (!%p696_p6), %s528_s4, 128  }
 0x3ab   : > { %914 = vsyncadd (!%p696_p6), %s528_s4, 4294967168  ;;  %s22_s17 = sadd.s32 1, %s937_s17   ;;  %s1267_s25 = sld [smem:[#allocation17_spill]] }
 0x3ac   : > { %p19_p13 = scmp.ge.s32.totalorder %s22_s17, 4   ;;  %s1268_s15 = sld [smem:[#allocation15_spill]] }
 0x3ad   : > { %s1269_s16 = sld [smem:[#allocation16_spill]]  ;;  %s1270_s12 = smov %s921_s13 }
 0x3ae   : > { %s1271_s13 = smov %s925_s14  ;;  %21 = sbr.rel (!%p19_p13) target bundleno = 10 (0xa), region = 109 }
 0x3b1   : > { %s1272_s14 = smov %s1267_s25 }
 0x3b5   :  { %533 = vsyncpa [#allocation6], 1 }
 0x3b6   :  { %535 = vsyncpa [#allocation6 + $0x1], 1 }
 0x3b7   :  { %536 = vsyncpa [#allocation9], 1 }
 0x3b8   :  { %538 = vsyncpa [#allocation9 + $0x1], 1 }
 0x3b9   :  { %539 = vsyncpa [#allocation7], 1 }
 0x3ba   :  { %541 = vsyncpa [#allocation7 + $0x1], 1 }

</bundles_post_ra>
